<compile_context>
chip_gen: v7x
topology: tpu7x:2x2x1
jax: 0.10.0
libtpu: 0.0.40
codegen_flags: <defaults>
</compile_context>

<pallas_src>
import math

import jax
import jax.numpy as jnp
from jax.experimental import pallas as pl
from jax.experimental.pallas import tpu as pltpu


# Below this size the XLA metadata/copy path is strictly faster than paying a
# pallas_call launch; above it the DMA kernel runs at the HBM copy roofline.
_SMALL_INPUT_BYTES = 2 * 1024 * 1024

# Up to this many concurrent DMAs (different queues) for one flatten copy.
_MAX_DMA_CHUNKS = 4


def _split_rows(n_rows: int, max_chunks: int = _MAX_DMA_CHUNKS):
    """Split [0, n_rows) into up to `max_chunks` contiguous (start, size) ranges."""
    k = max(1, min(max_chunks, n_rows))
    base, rem = divmod(n_rows, k)
    chunks, start = [], 0
    for i in range(k):
        size = base + (1 if i < rem else 0)
        if size > 0:
            chunks.append((start, size))
            start += size
    return tuple(chunks)


def _make_flatten_dma_kernel(row_chunks):
    """Kernel: HBM->HBM copy of a (B, CHW) buffer via `len(row_chunks)` DMAs."""

    def kernel(x_hbm_ref, o_hbm_ref, sems):
        # Issue every chunk first (keeps 2-4 DMAs in flight on separate
        # queues), then wait on all of them.  Row-range slicing keeps each
        # transfer a single contiguous flat element range.
        copies = [
            pltpu.make_async_copy(
                x_hbm_ref.at[pl.ds(r0, nr), :],
                o_hbm_ref.at[pl.ds(r0, nr), :],
                sems.at[i],
            )
            for i, (r0, nr) in enumerate(row_chunks)
        ]
        for c in copies:
            c.start()
        for c in copies:
            c.wait()

    return kernel


def flatten_pallas(x, full: bool = False, materialize: bool = True,
                   min_kernel_bytes: int = _SMALL_INPUT_BYTES):
    """Pallas implementation of Flatten.forward.

    full=False -> (B, C*H*W...),  full=True -> (B*C*H*W...,).
    materialize=False returns a metadata-only reshape (no copy, fastest path).
    materialize=True copies into a fresh buffer via an HBM->HBM DMA kernel
    (small inputs fall back to a plain reshape; set min_kernel_bytes=0 to
    force the kernel).
    """
    B = x.shape[0]
    CHW = int(math.prod(x.shape[1:]))
    out_shape = (B * CHW,) if full else (B, CHW)

    total = B * CHW
    itemsize = jnp.dtype(x.dtype).itemsize

    # Metadata-only fast path, degenerate sizes, and small-input bailout.
    if (not materialize) or total == 0 or total * itemsize < min_kernel_bytes:
        return x.reshape(out_shape)

    # (B, CHW) view of the contiguous buffer: metadata only, always valid,
    # no padding needed regardless of how ragged CHW is.
    x2d = x.reshape(B, CHW)
    row_chunks = _split_rows(B)

    out2d = pl.pallas_call(
        _make_flatten_dma_kernel(row_chunks),
        out_shape=jax.ShapeDtypeStruct((B, CHW), x.dtype),
        in_specs=[pl.BlockSpec(memory_space=pl.ANY)],
        out_specs=pl.BlockSpec(memory_space=pl.ANY),
        scratch_shapes=[pltpu.SemaphoreType.DMA((len(row_chunks),))],
        cost_estimate=pl.CostEstimate(
            flops=0, transcendentals=0, bytes_accessed=2 * total * itemsize),
    )(x2d)

    return out2d.reshape(out_shape)


if __name__ == "__main__":
    key = jax.random.PRNGKey(0)
    x = jax.random.normal(key, (2, 4, 16, 16), dtype=jnp.float32)

    # Kernel path (forced past the small-input bailout): full=False -> (B, C*H*W)
    y = flatten_pallas(x, full=False, min_kernel_bytes=0)
    jax.block_until_ready(y)
    y_ref = x.reshape(x.shape[0], -1)
    assert y.shape == (2, 4 * 16 * 16)
    assert jnp.array_equal(y, y_ref)

    # Kernel path: full=True -> (B*C*H*W,)
    y_full = flatten_pallas(x, full=True, min_kernel_bytes=0)
    jax.block_until_ready(y_full)
    assert y_full.shape == (2 * 4 * 16 * 16,)
    assert jnp.array_equal(y_full, x.reshape(-1))

    # Ragged shape (no multiples of 128 anywhere): no pad/copy/slice glue,
    # the DMA copies exactly total elements.
    x2 = jax.random.normal(key, (2, 3, 5, 7), dtype=jnp.float32)
    y2 = flatten_pallas(x2, full=False, min_kernel_bytes=0)
    jax.block_until_ready(y2)
    assert jnp.array_equal(y2, x2.reshape(x2.shape[0], -1))

    # Small-input bailout (default threshold): plain reshape, identical result.
    y_small = flatten_pallas(x, full=False)
    jax.block_until_ready(y_small)
    assert jnp.array_equal(y_small, y_ref)

    # Metadata-only fast path: zero copy, identical semantics.
    y_view = flatten_pallas(x, full=False, materialize=False)
    jax.block_until_ready(y_view)
    assert jnp.array_equal(y_view, y_ref)

    print("KERNEL_OK")
</pallas_src>

<mosaic_0001>
module attributes {stable_mosaic.version = 11 : i64} {
  func.func @kernel(%arg0: memref<2x1024xf32, #tpu.memory_space<any>>, %arg1: memref<2x1024xf32, #tpu.memory_space<any>>, %arg2: memref<2x!tpu.dma_semaphore, #tpu.memory_space<semaphore_mem>>) attributes {dimension_semantics = [], scalar_prefetch = 0 : i64, scratch_operands = 1 : i64, tpu.core_type = #tpu.core_type<tc>} {
    %c0_i32 = arith.constant 0 : i32
    %c0_i32_0 = arith.constant 0 : i32
    %c0_i32_1 = arith.constant 0 : i32
    %0 = tpu.memref_slice %arg0[%c0_i32_0, %c0_i32_1] : memref<2x1024xf32, #tpu.memory_space<any>> -> memref<1x1024xf32, #tpu.memory_space<any>>
    %c0_i32_2 = arith.constant 0 : i32
    %c0_i32_3 = arith.constant 0 : i32
    %1 = tpu.memref_slice %arg1[%c0_i32_2, %c0_i32_3] : memref<2x1024xf32, #tpu.memory_space<any>> -> memref<1x1024xf32, #tpu.memory_space<any>>
    %2 = tpu.memref_slice %arg2[%c0_i32] : memref<2x!tpu.dma_semaphore, #tpu.memory_space<semaphore_mem>> -> memref<1x!tpu.dma_semaphore, #tpu.memory_space<semaphore_mem>>
    %3 = tpu.memref_squeeze %2 : memref<1x!tpu.dma_semaphore, #tpu.memory_space<semaphore_mem>> -> memref<!tpu.dma_semaphore, #tpu.memory_space<semaphore_mem>>
    tpu.enqueue_dma source(%0 : memref<1x1024xf32, #tpu.memory_space<any>>) target(%1 : memref<1x1024xf32, #tpu.memory_space<any>>) target_semaphore(%3 : memref<!tpu.dma_semaphore, #tpu.memory_space<semaphore_mem>>)
    %c1_i32 = arith.constant 1 : i32
    %c1_i32_4 = arith.constant 1 : i32
    %c0_i32_5 = arith.constant 0 : i32
    %4 = tpu.memref_slice %arg0[%c1_i32_4, %c0_i32_5] : memref<2x1024xf32, #tpu.memory_space<any>> -> memref<1x1024xf32, #tpu.memory_space<any>>
    %c1_i32_6 = arith.constant 1 : i32
    %c0_i32_7 = arith.constant 0 : i32
    %5 = tpu.memref_slice %arg1[%c1_i32_6, %c0_i32_7] : memref<2x1024xf32, #tpu.memory_space<any>> -> memref<1x1024xf32, #tpu.memory_space<any>>
    %6 = tpu.memref_slice %arg2[%c1_i32] : memref<2x!tpu.dma_semaphore, #tpu.memory_space<semaphore_mem>> -> memref<1x!tpu.dma_semaphore, #tpu.memory_space<semaphore_mem>>
    %7 = tpu.memref_squeeze %6 : memref<1x!tpu.dma_semaphore, #tpu.memory_space<semaphore_mem>> -> memref<!tpu.dma_semaphore, #tpu.memory_space<semaphore_mem>>
    tpu.enqueue_dma source(%4 : memref<1x1024xf32, #tpu.memory_space<any>>) target(%5 : memref<1x1024xf32, #tpu.memory_space<any>>) target_semaphore(%7 : memref<!tpu.dma_semaphore, #tpu.memory_space<semaphore_mem>>)
    %c0_i32_8 = arith.constant 0 : i32
    %c0_i32_9 = arith.constant 0 : i32
    %c0_i32_10 = arith.constant 0 : i32
    %8 = tpu.memref_slice %arg0[%c0_i32_9, %c0_i32_10] : memref<2x1024xf32, #tpu.memory_space<any>> -> memref<1x1024xf32, #tpu.memory_space<any>>
    %c0_i32_11 = arith.constant 0 : i32
    %c0_i32_12 = arith.constant 0 : i32
    %9 = tpu.memref_slice %arg1[%c0_i32_11, %c0_i32_12] : memref<2x1024xf32, #tpu.memory_space<any>> -> memref<1x1024xf32, #tpu.memory_space<any>>
    %10 = tpu.memref_slice %arg2[%c0_i32_8] : memref<2x!tpu.dma_semaphore, #tpu.memory_space<semaphore_mem>> -> memref<1x!tpu.dma_semaphore, #tpu.memory_space<semaphore_mem>>
    %11 = tpu.memref_squeeze %10 : memref<1x!tpu.dma_semaphore, #tpu.memory_space<semaphore_mem>> -> memref<!tpu.dma_semaphore, #tpu.memory_space<semaphore_mem>>
    tpu.wait_dma2 semaphore(%11 : memref<!tpu.dma_semaphore, #tpu.memory_space<semaphore_mem>>) src(%8 : memref<1x1024xf32, #tpu.memory_space<any>>) dst(%9 : memref<1x1024xf32, #tpu.memory_space<any>>)
    %c1_i32_13 = arith.constant 1 : i32
    %c1_i32_14 = arith.constant 1 : i32
    %c0_i32_15 = arith.constant 0 : i32
    %12 = tpu.memref_slice %arg0[%c1_i32_14, %c0_i32_15] : memref<2x1024xf32, #tpu.memory_space<any>> -> memref<1x1024xf32, #tpu.memory_space<any>>
    %c1_i32_16 = arith.constant 1 : i32
    %c0_i32_17 = arith.constant 0 : i32
    %13 = tpu.memref_slice %arg1[%c1_i32_16, %c0_i32_17] : memref<2x1024xf32, #tpu.memory_space<any>> -> memref<1x1024xf32, #tpu.memory_space<any>>
    %14 = tpu.memref_slice %arg2[%c1_i32_13] : memref<2x!tpu.dma_semaphore, #tpu.memory_space<semaphore_mem>> -> memref<1x!tpu.dma_semaphore, #tpu.memory_space<semaphore_mem>>
    %15 = tpu.memref_squeeze %14 : memref<1x!tpu.dma_semaphore, #tpu.memory_space<semaphore_mem>> -> memref<!tpu.dma_semaphore, #tpu.memory_space<semaphore_mem>>
    tpu.wait_dma2 semaphore(%15 : memref<!tpu.dma_semaphore, #tpu.memory_space<semaphore_mem>>) src(%12 : memref<1x1024xf32, #tpu.memory_space<any>>) dst(%13 : memref<1x1024xf32, #tpu.memory_space<any>>)
    return
  }
}

</mosaic_0001>

<bundles_post_ra>
// kernel: tpu_custom_call.1
= control target key start
LH: loop header
LB: loop body
LE: loop exit
PB: predicated region body
PF: predicated region fallthrough
CT: control target
= control target key end

     0   :  { %s78_s6 = smov 32   ;;  %s79_s7 = smov 1   ;;  %s107_s0 = inlined_call_operand.hbm [shape: f32[2,1024], index: 0, kind: input, shape index: {}]   ;;  %s108_s1 = inlined_call_operand.hbm [shape: f32[2,1024], index: 1, kind: output, shape index: {}]  }
   0x1   :  { %18 = sst [smem:[#allocation4]] %s78_s6  ;;  %s80_s8 = smov [#allocation2]  }
   0x2   :  { %20 = sst [smem:[#allocation4 + $0x1]] %s78_s6  ;;  %s81_s9 = smov [#allocation3]  }
   0x3   :  { %22 = sst [smem:[#allocation4 + $0x2]] %s79_s7  ;;  %s82_s10 = smov 0  }
   0x4   :  { %24 = dma.general %s107_s0, 128, %s108_s1, %s80_s8, %s81_s9, [#allocation4], %s82_s10, 0  }
   0x5   :  { %40 = sst [smem:[#allocation6]] %s78_s6  ;;  %s25_s17 = scalar_lea.hbm %s107_s0, 16 }
   0x6   :  { %42 = sst [smem:[#allocation6 + $0x1]] %s78_s6  ;;  %s26_s20 = scalar_lea.hbm %s108_s1, 16 }
   0x7   :  { %44 = sst [smem:[#allocation6 + $0x2]] %s79_s7  ;;  %s83_s21 = smov [#allocation2 + $0x1]  }
   0x8   :  { %s84_s22 = smov [#allocation5]  }
   0x9   :  { %46 = dma.general %s25_s17, 128, %s26_s20, %s83_s21, %s84_s22, [#allocation6], %s82_s10, 0  }
   0xa   :  { %74 = dma.done.wait [#allocation2], 128 }
   0xb   :  { %75 = vsyncadd [#allocation2], 4294967168 }
   0xc   :  { %76 = dma.done.wait [#allocation2 + $0x1], 128 }
   0xd   :  { %77 = vsyncadd [#allocation2 + $0x1], 4294967168 }
   0xe   :  { %52 = vsyncmov [#allocation2] }
  0x11   :  { %s53_s23 = vpop.sfrf %52 }
  0x12   :  { %p65_p0 = scmp.ne.s32.totalorder %s53_s23, 0 }
  0x14   :  { %57 = shalt.err (%p65_p0)  }
  0x15   :  { %59 = vsyncmov [#allocation2 + $0x1] }
  0x18   :  { %s60_s24 = vpop.sfrf %59 }
  0x19   :  { %p66_p1 = scmp.ne.s32.totalorder %s60_s24, 0 }
  0x1b   :  { %64 = shalt.err (%p66_p1)  }

</bundles_post_ra>
